<compile_context>
chip_gen: v6e
topology: v6e:2x2x1
jax: 0.10.0
libtpu: 0.0.40
codegen_flags: <defaults>
</compile_context>

<pallas_src>
import jax
import jax.numpy as jnp
from jax.experimental import pallas as pl
from jax.experimental.pallas import tpu as pltpu


def resblock_kernel(x_ref, w1_ref, b1_ref, w2_ref, b2_ref, o_ref):
    # x_ref : (NB, C, L)  NB batch elements, channels-first (PyTorch NCL layout)
    # w*_ref: (C, 3C)     im2col weights, column blocks ordered [tap0 | tap1 | tap2]
    # b*_ref: (C, 1)
    # o_ref : (NB, C, L)
    NB, C, L = x_ref.shape
    x = x_ref[...]                                            # (NB, C, L), native dtype

    # Lane-index boundary mask for the conv halo (whole L axis is in this block).
    lane = jax.lax.broadcasted_iota(jnp.int32, (NB, C, L), 2)
    is_first = lane == 0
    is_last = lane == (L - 1)

    def conv3(v, w_ref, b_ref):
        # 3-tap conv (padding=1) along the lane (L) axis as one batched im2col
        # matmul.  tap0 reads v[..., l-1] (zero at l=0); tap2 reads v[..., l+1]
        # (zero at l=L-1).  Shifted taps are built in-register on the XLU.
        v_prev = jnp.where(is_first, 0.0, pltpu.roll(v, 1, axis=2))
        v_next = jnp.where(is_last, 0.0, pltpu.roll(v, L - 1, axis=2))
        v_cat = jnp.concatenate([v_prev, v, v_next], axis=1)   # (NB, 3C, L)
        # Tiny, hoisted weight broadcast: (C, 3C) -> (NB, C, 3C).
        w_b = jnp.broadcast_to(w_ref[...], (NB, C, 3 * C))
        acc = jnp.einsum("nok,nkl->nol", w_b, v_cat,
                         preferred_element_type=jnp.float32)   # (NB, C, L) f32
        return acc + b_ref[...]                                # (C,1) bcast over NB, L

    h = conv3(x, w1_ref, b1_ref)                               # conv #1, f32
    h = jnp.maximum(h, 0.1 * h)                                # LeakyReLU(0.1)
    y = conv3(h.astype(x.dtype), w2_ref, b2_ref)               # conv #2, f32
    o_ref[...] = y.astype(o_ref.dtype)


def _pick_batch_block(n, max_nb=32):
    """Largest divisor of n that still leaves >=2 grid steps when n >= 2, so the
    parallel batch axis can be sharded across v7x's two TensorCores; capped at
    max_nb to bound the per-step VMEM footprint."""
    if n <= 1:
        return max(n, 1)
    target = min(max_nb, n // 2)
    for nb in range(target, 0, -1):
        if n % nb == 0:
            return nb
    return 1


def residual_block_pallas(x_ncl, w1, b1, w2, b2):
    """x_ncl: (N, C, L) exactly like the PyTorch module.  Returns (N, C, L)."""
    N, C, L = x_ncl.shape
    nb = _pick_batch_block(N)
    grid = (N // nb,)

    # (Cout, Cin, K=3) -> (Cout, K*Cin): column block k holds w[:, :, k] so it
    # lines up with the [prev | cur | next] row stacking inside the kernel.
    w1cat = jnp.transpose(w1, (0, 2, 1)).reshape(C, 3 * C)
    w2cat = jnp.transpose(w2, (0, 2, 1)).reshape(C, 3 * C)
    b1r = b1.reshape(C, 1)
    b2r = b2.reshape(C, 1)

    itemsize = jnp.dtype(x_ncl.dtype).itemsize
    cost = pl.CostEstimate(
        flops=2 * 2 * C * (3 * C) * L * N,                 # 2 convs, 2 flops/MAC
        transcendentals=0,
        bytes_accessed=2 * N * C * L * itemsize + 2 * (3 * C * C + C) * 4,
    )

    return pl.pallas_call(
        resblock_kernel,
        out_shape=jax.ShapeDtypeStruct((N, C, L), x_ncl.dtype),
        grid=grid,
        in_specs=[
            pl.BlockSpec((nb, C, L), lambda n: (n, 0, 0)),
            pl.BlockSpec((C, 3 * C), lambda n: (0, 0)),
            pl.BlockSpec((C, 1), lambda n: (0, 0)),
            pl.BlockSpec((C, 3 * C), lambda n: (0, 0)),
            pl.BlockSpec((C, 1), lambda n: (0, 0)),
        ],
        out_specs=pl.BlockSpec((nb, C, L), lambda n: (n, 0, 0)),
        compiler_params=pltpu.CompilerParams(
            dimension_semantics=("parallel",)),
        cost_estimate=cost,
    )(x_ncl, w1cat, b1r, w2cat, b2r)


def residual_block_ref(x_ncl, w1, b1, w2, b2):
    """Pure-JAX reference using lax.conv (NCH layout, same as PyTorch)."""
    dn = ("NCH", "OIH", "NCH")
    h = jax.lax.conv_general_dilated(x_ncl, w1, (1,), ((1, 1),),
                                     dimension_numbers=dn)
    h = h + b1[None, :, None]
    h = jnp.where(h >= 0.0, h, 0.1 * h)
    y = jax.lax.conv_general_dilated(h, w2, (1,), ((1, 1),),
                                     dimension_numbers=dn)
    return y + b2[None, :, None]


if __name__ == "__main__":
    # Conv1d input is (batch, feat_dim, seq_len).  L=128 keeps the lane axis
    # fully dense; C=8 is one full sublane tile; N=8 -> NB=4, grid=(2,) so v7x
    # splits the batch across both TensorCores while each step still moves a
    # 4x8x128 block.
    N, C, L = 8, 8, 128

    key = jax.random.PRNGKey(0)
    kx, kw1, kb1, kw2, kb2 = jax.random.split(key, 5)

    x = jax.random.normal(kx, (N, C, L), dtype=jnp.float32)
    # Conv1d(feat_dim, feat_dim, 3) weights: (Cout, Cin, K), biases: (Cout,)
    w1 = 0.1 * jax.random.normal(kw1, (C, C, 3), dtype=jnp.float32)
    b1 = 0.1 * jax.random.normal(kb1, (C,), dtype=jnp.float32)
    w2 = 0.1 * jax.random.normal(kw2, (C, C, 3), dtype=jnp.float32)
    b2 = 0.1 * jax.random.normal(kb2, (C,), dtype=jnp.float32)

    out = jax.block_until_ready(residual_block_pallas(x, w1, b1, w2, b2))
    ref = residual_block_ref(x, w1, b1, w2, b2)

    assert out.shape == (N, C, L)
    err = jnp.max(jnp.abs(out - ref))
    assert jnp.allclose(out, ref, rtol=1e-4, atol=1e-4), f"max err {err}"

    print("KERNEL_OK")
</pallas_src>

<mosaic_0001>
module attributes {stable_mosaic.version = 11 : i64} {
  func.func @resblock_kernel(%arg0: i32, %arg1: memref<4x8x128xf32, #tpu.memory_space<vmem>>, %arg2: memref<8x24xf32, #tpu.memory_space<vmem>>, %arg3: memref<8x1xf32, #tpu.memory_space<vmem>>, %arg4: memref<8x24xf32, #tpu.memory_space<vmem>>, %arg5: memref<8x1xf32, #tpu.memory_space<vmem>>, %arg6: memref<4x8x128xf32, #tpu.memory_space<vmem>>) attributes {dimension_semantics = [#tpu.dimension_semantics<parallel>], iteration_bounds = array<i64: 2>, scalar_prefetch = 0 : i64, scratch_operands = 0 : i64, tpu.core_type = #tpu.core_type<tc>, window_params = [{transform_indices = @transform_0, window_bounds = array<i64: 4, 8, 128>}, {pipeline_mode = #tpu.pipeline_mode<synchronous>, transform_indices = @transform_1, window_bounds = array<i64: 8, 24>}, {pipeline_mode = #tpu.pipeline_mode<synchronous>, transform_indices = @transform_2, window_bounds = array<i64: 8, 1>}, {pipeline_mode = #tpu.pipeline_mode<synchronous>, transform_indices = @transform_3, window_bounds = array<i64: 8, 24>}, {pipeline_mode = #tpu.pipeline_mode<synchronous>, transform_indices = @transform_4, window_bounds = array<i64: 8, 1>}, {transform_indices = @transform_5, window_bounds = array<i64: 4, 8, 128>}]} {
    %c0 = arith.constant 0 : index
    %c0_0 = arith.constant 0 : index
    %c0_1 = arith.constant 0 : index
    %0 = vector.load %arg1[%c0, %c0_0, %c0_1] : memref<4x8x128xf32, #tpu.memory_space<vmem>>, vector<4x8x128xf32>
    %1 = tpu.iota {dimensions = array<i32: 2>} : vector<4x8x128xi32>
    %c0_i32 = arith.constant 0 : i32
    %2 = vector.broadcast %c0_i32 : i32 to vector<4x8x128xi32>
    %3 = arith.cmpi eq, %1, %2 : vector<4x8x128xi32>
    %c127_i32 = arith.constant 127 : i32
    %4 = vector.broadcast %c127_i32 : i32 to vector<4x8x128xi32>
    %5 = arith.cmpi eq, %1, %4 : vector<4x8x128xi32>
    %c1_i32 = arith.constant 1 : i32
    %6 = tpu.dynamic_rotate %0 by %c1_i32 dim 2 : vector<4x8x128xf32>, i32 -> vector<4x8x128xf32>
    %cst = arith.constant 0.000000e+00 : f32
    %7 = vector.broadcast %cst : f32 to vector<4x8x128xf32>
    %8 = arith.select %3, %7, %6 : vector<4x8x128xi1>, vector<4x8x128xf32>
    %c127_i32_2 = arith.constant 127 : i32
    %9 = tpu.dynamic_rotate %0 by %c127_i32_2 dim 2 : vector<4x8x128xf32>, i32 -> vector<4x8x128xf32>
    %cst_3 = arith.constant 0.000000e+00 : f32
    %10 = vector.broadcast %cst_3 : f32 to vector<4x8x128xf32>
    %11 = arith.select %5, %10, %9 : vector<4x8x128xi1>, vector<4x8x128xf32>
    %12 = tpu.concatenate %8, %0, %11 in 1 : vector<4x8x128xf32>, vector<4x8x128xf32>, vector<4x8x128xf32> -> vector<4x24x128xf32>
    %c0_4 = arith.constant 0 : index
    %c0_5 = arith.constant 0 : index
    %13 = vector.load %arg2[%c0_4, %c0_5] : memref<8x24xf32, #tpu.memory_space<vmem>>, vector<8x24xf32>
    %14 = vector.shape_cast %13 : vector<8x24xf32> to vector<1x8x24xf32>
    %15 = vector.broadcast %14 : vector<1x8x24xf32> to vector<4x8x24xf32>
    "tpu.trace_start"() <{level = 10 : i32, message = "nok,nkl->nol"}> : () -> ()
    %cst_6 = arith.constant dense<0.000000e+00> : vector<4x8x128xf32>
    %16 = tpu.matmul %15, %12, %cst_6 {dimension_numbers = #tpu.dot_dimension_numbers<[2], [1], [1], [2], [0, 0, 0, 1, 1, 2], [0], [0]>} : vector<4x8x24xf32>, vector<4x24x128xf32>, vector<4x8x128xf32> -> vector<4x8x128xf32>
    "tpu.trace_stop"() : () -> ()
    %c0_7 = arith.constant 0 : index
    %c0_8 = arith.constant 0 : index
    %17 = vector.load %arg3[%c0_7, %c0_8] : memref<8x1xf32, #tpu.memory_space<vmem>>, vector<8x1xf32>
    %18 = vector.shape_cast %17 : vector<8x1xf32> to vector<1x8x1xf32>
    %19 = vector.broadcast %18 : vector<1x8x1xf32> to vector<4x8x128xf32>
    %20 = arith.addf %16, %19 : vector<4x8x128xf32>
    %cst_9 = arith.constant 1.000000e-01 : f32
    %21 = vector.broadcast %cst_9 : f32 to vector<4x8x128xf32>
    %22 = arith.mulf %21, %20 : vector<4x8x128xf32>
    %23 = arith.maximumf %20, %22 : vector<4x8x128xf32>
    %c1_i32_10 = arith.constant 1 : i32
    %24 = tpu.dynamic_rotate %23 by %c1_i32_10 dim 2 : vector<4x8x128xf32>, i32 -> vector<4x8x128xf32>
    %cst_11 = arith.constant 0.000000e+00 : f32
    %25 = vector.broadcast %cst_11 : f32 to vector<4x8x128xf32>
    %26 = arith.select %3, %25, %24 : vector<4x8x128xi1>, vector<4x8x128xf32>
    %c127_i32_12 = arith.constant 127 : i32
    %27 = tpu.dynamic_rotate %23 by %c127_i32_12 dim 2 : vector<4x8x128xf32>, i32 -> vector<4x8x128xf32>
    %cst_13 = arith.constant 0.000000e+00 : f32
    %28 = vector.broadcast %cst_13 : f32 to vector<4x8x128xf32>
    %29 = arith.select %5, %28, %27 : vector<4x8x128xi1>, vector<4x8x128xf32>
    %30 = tpu.concatenate %26, %23, %29 in 1 : vector<4x8x128xf32>, vector<4x8x128xf32>, vector<4x8x128xf32> -> vector<4x24x128xf32>
    %c0_14 = arith.constant 0 : index
    %c0_15 = arith.constant 0 : index
    %31 = vector.load %arg4[%c0_14, %c0_15] : memref<8x24xf32, #tpu.memory_space<vmem>>, vector<8x24xf32>
    %32 = vector.shape_cast %31 : vector<8x24xf32> to vector<1x8x24xf32>
    %33 = vector.broadcast %32 : vector<1x8x24xf32> to vector<4x8x24xf32>
    "tpu.trace_start"() <{level = 10 : i32, message = "nok,nkl->nol"}> : () -> ()
    %cst_16 = arith.constant dense<0.000000e+00> : vector<4x8x128xf32>
    %34 = tpu.matmul %33, %30, %cst_16 {dimension_numbers = #tpu.dot_dimension_numbers<[2], [1], [1], [2], [0, 0, 0, 1, 1, 2], [0], [0]>} : vector<4x8x24xf32>, vector<4x24x128xf32>, vector<4x8x128xf32> -> vector<4x8x128xf32>
    "tpu.trace_stop"() : () -> ()
    %c0_17 = arith.constant 0 : index
    %c0_18 = arith.constant 0 : index
    %35 = vector.load %arg5[%c0_17, %c0_18] : memref<8x1xf32, #tpu.memory_space<vmem>>, vector<8x1xf32>
    %36 = vector.shape_cast %35 : vector<8x1xf32> to vector<1x8x1xf32>
    %37 = vector.broadcast %36 : vector<1x8x1xf32> to vector<4x8x128xf32>
    %38 = arith.addf %34, %37 : vector<4x8x128xf32>
    %c0_19 = arith.constant 0 : index
    %c0_20 = arith.constant 0 : index
    %c0_21 = arith.constant 0 : index
    %39 = vector.load %arg6[%c0_19, %c0_20, %c0_21] : memref<4x8x128xf32, #tpu.memory_space<vmem>>, vector<4x8x128xf32>
    tpu.vector_store %arg6[%c0_19, %c0_20, %c0_21], %38 {strides = array<i32>} : memref<4x8x128xf32, #tpu.memory_space<vmem>>, vector<4x8x128xf32>,
    return
  }
  func.func @transform_0(%arg0: i32) -> (i32, i32, i32) {
    %c0_i32 = arith.constant 0 : i32
    %c0_i32_0 = arith.constant 0 : i32
    %c0_i32_1 = arith.constant 0 : i32
    return %arg0, %c0_i32, %c0_i32_0 : i32, i32, i32
  }
  func.func @transform_1(%arg0: i32) -> (i32, i32) {
    %c0_i32 = arith.constant 0 : i32
    %c0_i32_0 = arith.constant 0 : i32
    %c0_i32_1 = arith.constant 0 : i32
    return %c0_i32, %c0_i32_0 : i32, i32
  }
  func.func @transform_2(%arg0: i32) -> (i32, i32) {
    %c0_i32 = arith.constant 0 : i32
    %c0_i32_0 = arith.constant 0 : i32
    %c0_i32_1 = arith.constant 0 : i32
    return %c0_i32, %c0_i32_0 : i32, i32
  }
  func.func @transform_3(%arg0: i32) -> (i32, i32) {
    %c0_i32 = arith.constant 0 : i32
    %c0_i32_0 = arith.constant 0 : i32
    %c0_i32_1 = arith.constant 0 : i32
    return %c0_i32, %c0_i32_0 : i32, i32
  }
  func.func @transform_4(%arg0: i32) -> (i32, i32) {
    %c0_i32 = arith.constant 0 : i32
    %c0_i32_0 = arith.constant 0 : i32
    %c0_i32_1 = arith.constant 0 : i32
    return %c0_i32, %c0_i32_0 : i32, i32
  }
  func.func @transform_5(%arg0: i32) -> (i32, i32, i32) {
    %c0_i32 = arith.constant 0 : i32
    %c0_i32_0 = arith.constant 0 : i32
    %c0_i32_1 = arith.constant 0 : i32
    return %arg0, %c0_i32, %c0_i32_0 : i32, i32, i32
  }
}

</mosaic_0001>

<bundles_post_ra>
// kernel: tpu_custom_call.1
= control target key start
LH: loop header
LB: loop body
LE: loop exit
PB: predicated region body
PF: predicated region fallthrough
CT: control target
= control target key end

     0   :  { %10 = vsyncpa [#allocation3], 0  ;;  %s1604_s0 = inlined_call_operand.hbm [shape: f32[8,8,128], index: 0, kind: input, shape index: {}]   ;;  %s1605_s1 = inlined_call_operand.vmem [shape: f32[8,24], index: 1, kind: input, shape index: {}]   ;;  %s1606_s2 = inlined_call_operand.vmem [shape: f32[8,1], index: 2, kind: input, shape index: {}]   ;;  %s1607_s3 = inlined_call_operand.vmem [shape: f32[8,24], index: 3, kind: input, shape index: {}]   ;;  %s1608_s4 = inlined_call_operand.vmem [shape: f32[8,1], index: 4, kind: input, shape index: {}]   ;;  %s1609_s5 = inlined_call_operand.hbm [shape: f32[8,8,128], index: 5, kind: output, shape index: {}]  }
   0x1   :  { %12 = vsyncpa [#allocation3 + $0x1], 0 }
   0x2   :  { %13 = vsyncpa [#allocation4], 0 }
   0x3   :  { %15 = vsyncpa [#allocation4 + $0x1], 0  ;;  %s1334_s18 = smov 0   ;;  %s1336_s19 = smov 0  }
   0x4   :  { %s1338_s20 = smov 0   ;;  %s1340_s21 = smov 0  }
   0x5 LB: > { %s1355_s22 = sadd.s32 4294967295, %s1291_s21   ;;  %s981_s23 = sadd.s32 4294967294, %s1291_s21   ;;  %s1291_s21 = sphi %s1340_s21, %s1624_s21   ;;  %s1287_s20 = sphi %s1338_s20, %s1623_s20   ;;  %s1283_s19 = sphi %s1336_s19, %s1622_s19   ;;  %s1279_s18 = sphi %s1334_s18, %s1621_s18  }
   0x6   : > { %s1359_s24 = sadd.s32 1, %s1291_s21   ;;  %s28_s25 = sadd.s32 1, %s1287_s20 }
   0x7   : > { %s25_s26 = ssub.s32 %s1291_s21, %s1359_s24  ;;  %p35_p0 = scmp.ne.s32.totalorder %s1287_s20, %s1283_s19 }
   0x8   : > { %p26_p1 = scmp.eq.s32.totalorder %s25_s26, 0  ;;  %p36_p2 = scmp.eq.s32.totalorder %s1291_s21, 0 }
   0x9   : > { %p41_p3 = scmp.ne.s32.totalorder %s1283_s19, %s1279_s18  ;;  %p42_p4 = scmp.eq.s32.totalorder %s1355_s22, 0 }
   0xa   : > { %s1371_s27 = scalar_select %p26_p1, %s1287_s20, %s28_s25  }
   0xb   : > { %p1373_p5 = por %p36_p2, %p35_p0  ;;  %p1377_p6 = por %p42_p4, %p41_p3 }
   0xc   : > { %p149_p7 = scmp.eq.s32.totalorder %s1355_s22, 1  ;;  %p155_p8 = scmp.eq.s32.totalorder %s981_s23, 1 }
   0xd   : > { %s1613_s29 = scalar_select %p1377_p6, 1, 0 }
   0xe   : > { %p1155_p10 = scmp.lt.s32.totalorder %s1291_s21, 2  ;;  %p1384_p11 = por %p149_p7, %p35_p0 }
   0xf   : > { %p1388_p12 = por %p155_p8, %p41_p3  ;;  %s187_s7 = sand.u32 1, %s1287_s20  }
  0x10   : > { %s1614_s30 = scalar_select %p1384_p11, 1, 0 }
  0x11   : > { %s1615_s6 = scalar_select %p1388_p12, 1, 0 }
  0x12   : > { %s1035_s8 = sshll.u32 %s1291_s21, 9  ;;  %s984_s9 = sshll.u32 %s187_s7, 5 }
  0x13   : > { %s1397_s12 = scalar_lea.hbm %s1604_s0, %s1035_s8  ;;  %s191_s13 = scalar_lea.vmem [#allocation2], %s984_s9 }
  0x14   : > { %s198_s14 = sshll.u32 %s191_s13, 4  ;;  %p1401_p13 = pnand %p1155_p10, %p1373_p5  ;;  %s1405_s14 = int_to_ptr.vmem [resolvable:$true] %s198_s14 }
  0x15   : > { %s1407_s16 = scalar_lea.sflag [#allocation3], %s187_s7  ;;  %s1199_s17 = scalar_lea.hbm %s1397_s12, 512 }
  0x16   : > { %p1200_p0 = scmp.ne.s32.totalorder %s1397_s12, %s1199_s17  ;;  %p1201_p1 = pneg %p1401_p13 }
  0x17   : > { %s1204_s26 = scalar_lea.hbm %s1604_s0, 1024  ;;  %p1205_p4 = scmp.lt.s32.totalorder %s1397_s12, %s1604_s0 }
  0x18   : > { %p1202_p2 = pnand %p1201_p1, %p1200_p0  ;;  %p1206_p5 = scmp.lt.s32.totalorder %s1204_s26, %s1199_s17 }
  0x1a   : > { %p1203_p3 = pneg %p1202_p2  ;;  %p1207_p7 = por %p1206_p5, %p1205_p4 }
  0x1c   : > { %p1208_p8 = pnand %p1207_p7, %p1203_p3 }
  0x1e   : > { %1211 = shalt.err (!%p1208_p8)
}
  0x1f   : > { %s1212_s7 = scalar_lea.vmem %s1405_s14, 512  ;;  %s1293_s9 = smov [#allocation2]  }
  0x20   : > { %p1213_p10 = scmp.ne.s32.totalorder %s1405_s14, %s1212_s7  ;;  %s1217_s10 = sshll.u32 %s1293_s9, 4  ;;  %s1218_s10 = int_to_ptr.vmem [resolvable:$false] %s1217_s10 }
  0x21   : > { %s1219_s11 = scalar_lea.vmem %s1218_s10, 1024  ;;  %p1220_p2 = scmp.lt.s32.totalorder %s1405_s14, %s1218_s10 }
  0x22   : > { %p1215_p9 = pnand %p1213_p10, %p1201_p1  ;;  %p1221_p12 = scmp.lt.s32.totalorder %s1219_s11, %s1212_s7 }
  0x24   : > { %p1216_p0 = pneg %p1215_p9  ;;  %p1222_p11 = por %p1221_p12, %p1220_p2 }
  0x26   : > { %p1223_p6 = pnand %p1222_p11, %p1216_p0 }
  0x28   : > { %1226 = shalt.err (!%p1223_p6)
}
  0x29   : > { %s1294_s13 = smov 128   ;;  %s1295_s17 = smov 8  }
  0x2a   : > { %1150 = dma.hbm_to_vmem [thread:$0]  (!%p1401_p13), %s1397_s12, 512, %s1405_s14, %s1407_s16, %s1294_s13, %s1294_s13, %s1295_s17  }
  0x2b   : > { %p987_p9 = scmp.ge.s32.totalorder %s1291_s21, 1  ;;  %p206_p1 = scmp.lt.s32.totalorder %s1291_s21, 3 }
  0x2d   : > { %p207_p3 = pnand %p987_p9, %p206_p1 }
  0x2e   : > { %s1431_s23 = sand.u32 (!%p207_p3), 1, %s1283_s19   ;;  %p1617_p6 = scmp.ne.s32.totalorder (!%p207_p3), %s1613_s29, 0 }
  0x2f   : > { %210 = sbr.rel (%p207_p3) target bundleno = 716 (0x2cc), region = 40  ;;  %s988_s25 = sshll.u32 (!%p207_p3), %s1431_s23, 5 }
  0x30   : > { %s213_s26 = scalar_lea.sflag (!%p207_p3), [#allocation3], %s1431_s23  ;;  %s216_s28 = scalar_lea.vmem (!%p207_p3), [#allocation2], %s988_s25 }
  0x34   : > { %1270 = dma.done.wait (%p1617_p6), %s213_s26, 512  }
  0x35   : > { %1272 = vsyncadd (%p1617_p6), %s213_s26, 4294966784  ;;  %v1296_v0 = vmov 0.0   ;;  %vm1297_vm0 = vmmov 0   ;;  %v245_v1 = vld [vmem:[%s216_s28] sm:$0xff]  ;;  %s1298_s12 = smov 127   ;;  %s1299_s14 = smov 1   ;;  %v249_v7 = vlaneseq }
  0x36   : > { %1071 = vmatprep.subr.mxu0 %v1296_v0  ;;  %1080 = vmatprep.subr.mxu1 %v1296_v0  ;;  %v246_v2 = vld [vmem:[%s216_s28 + $0x8] sm:$0xff]  ;;  %v247_v3 = vld [vmem:[%s216_s28 + $0x10] sm:$0xff]  ;;  %v248_v4 = vld [vmem:[%s216_s28 + $0x18] sm:$0xff]  ;;  %v1300_v5 = vmov 0   ;;  %vm284_vm3 = vcmask 195584   ;;  %s242_s13 = scalar_lea.vmem [#allocation5], %s988_s25 }
  0x37   : > { %1077 = vmatprep.mubr.msk.f32.mxu0 %vm1297_vm0, %v1296_v0  ;;  %1086 = vmatprep.mubr.msk.f32.mxu1 %vm1297_vm0, %v1296_v0  ;;  %v278_v6 = vld [vmem:[%s1606_s2] sm:$0xff]  ;;  %v1458_v8 = vand.u32 127, %v249_v7  ;;  %s908_s17 = sshll.u32 %s242_s13, 4  ;;  %s1036_s26 = sshll.u32 %s1355_s22, 9  ;;  %s1556_s17 = int_to_ptr.vmem [resolvable:$true] %s908_s17 }
  0x38   : > { %265 = vrot.lane.b32.xlu0 %v245_v1, %s1298_s12  ;;  %253 = vrot.lane.b32.xlu1 %v245_v1, %s1299_s14  ;;  %v277_v11 = vld [vmem:[%s1605_s1] sm:$0xff]  ;;  %s1227_s29 = scalar_lea.vmem %s1556_s17, 512  ;;  %p1618_p12 = scmp.ne.s32.totalorder %s1614_s30, 0 }
  0x39   : > { %1198 = vset.pattern.permute.xlu0 %v1300_v5  ;;  %vm1037_vm1 = vcmp.ne.s32.totalorder %v1458_v8, 127  ;;  %vm1038_vm2 = vcmp.ne.s32.totalorder %v1458_v8, 0  ;;  %v601_v39 = vld [vmem:[%s1608_s4] sm:$0xff]  ;;  %p1228_p11 = scmp.ne.s32.totalorder %s1556_s17, %s1227_s29  ;;  %s1301_s22 = smov [#allocation5]  }
  0x3a   : > { %v600_v41 = vld [vmem:[%s1607_s3] sm:$0xff]  ;;  %s1231_s15 = sshll.u32 %s1301_s22, 4  ;;  %s1232_s15 = int_to_ptr.vmem [resolvable:$false] %s1231_s15 }
  0x3b   : > { %p1229_p13 = pnand %p1228_p11, %p1618_p12  ;;  %s1233_s16 = scalar_lea.vmem %s1232_s15, 1024 }
  0x3c   : > { %267 = vrot.lane.b32.xlu0 %v246_v2, %s1298_s12  ;;  %255 = vrot.lane.b32.xlu1 %v246_v2, %s1299_s14  ;;  %p1234_p5 = scmp.lt.s32.totalorder %s1556_s17, %s1232_s15  ;;  %p1235_p7 = scmp.lt.s32.totalorder %s1233_s16, %s1227_s29 }
  0x3d   : > { %p1230_p4 = pneg %p1229_p13 }
  0x3e   : > { %p1236_p8 = por %p1235_p7, %p1234_p5 }
  0x40   : > { %269 = vrot.lane.b32.xlu0 %v247_v3, %s1298_s12  ;;  %271 = vrot.lane.b32.xlu1 %v248_v4, %s1298_s12  ;;  %p1237_p10 = pnand %p1236_p8, %p1230_p4 }
  0x44   : > { %257 = vrot.lane.b32.xlu0 %v247_v3, %s1299_s14  ;;  %259 = vrot.lane.b32.xlu1 %v248_v4, %s1299_s14 }
  0x48   : > { %281 = vperm.xlu0 %1198, %v278_v6  }
  0xaa   : > { %v266_v9 = vpop.permute.xlu0 %265  ;;  %v254_v10 = vpop.permute.xlu1 %253 }
  0xab   : > { %1072 = vmatpush3.msk.msra.mxu0 %vm1037_vm1, %v266_v9 }
  0xac   : > { %1073 = vmatprep.subr.mxu0 %v1296_v0 }
  0xad   : > { %1074 = vmatpush3.msra.mxu0 %v245_v1 }
  0xae   : > { %1075 = vmatprep.subr.mxu0 %v1296_v0  ;;  %v268_v12 = vpop.permute.xlu0 %267  ;;  %v256_v13 = vpop.permute.xlu1 %255 }
  0xaf   : > { %1076 = vmatpush3.msk.msra.mxu0 %vm1038_vm2, %v254_v10  ;;  %1081 = vmatpush3.msk.msra.mxu1 %vm1037_vm1, %v268_v12 }
  0xb0   : > { %1078 = vmatmul.mubr.msk.f32.vlgmr.msra.gmra.mxu0 %vm284_vm3, %v277_v11  ;;  %1082 = vmatprep.subr.mxu1 %v1296_v0 }
  0xb1   : > { %1083 = vmatpush3.msra.mxu1 %v246_v2  ;;  %1089 = vmatprep.subr.mxu0 %v1296_v0 }
  0xb2   : > { %1084 = vmatprep.subr.mxu1 %v1296_v0  ;;  %v270_v14 = vpop.permute.xlu0 %269  ;;  %v272_v15 = vpop.permute.xlu1 %271  ;;  %1095 = vmatprep.mubr.msk.f32.mxu0 %vm1297_vm0, %v1296_v0 }
  0xb3   : > { %1085 = vmatpush3.msk.msra.mxu1 %vm1038_vm2, %v256_v13  ;;  %1090 = vmatpush3.msk.msra.mxu0 %vm1037_vm1, %v270_v14 }
  0xb4   : > { %1087 = vmatmul.mubr.msk.f32.vlgmr.msra.gmra.mxu1 %vm284_vm3, %v277_v11  ;;  %1091 = vmatprep.subr.mxu0 %v1296_v0 }
  0xb5   : > { %1098 = vmatprep.subr.mxu1 %v1296_v0  ;;  %1092 = vmatpush3.msra.mxu0 %v247_v3 }
  0xb6   : > { %1099 = vmatpush3.msk.msra.mxu1 %vm1037_vm1, %v272_v15  ;;  %1093 = vmatprep.subr.mxu0 %v1296_v0  ;;  %v258_v16 = vpop.permute.xlu0 %257  ;;  %v260_v17 = vpop.permute.xlu1 %259 }
  0xb7   : > { %1100 = vmatprep.subr.mxu1 %v1296_v0  ;;  %1094 = vmatpush3.msk.msra.mxu0 %vm1038_vm2, %v258_v16 }
  0xb8   : > { %1101 = vmatpush3.msra.mxu1 %v248_v4  ;;  %1096 = vmatmul.mubr.msk.f32.vlgmr.msra.gmra.mxu0 %vm284_vm3, %v277_v11 }
  0xb9   : > { %1102 = vmatprep.subr.mxu1 %v1296_v0  ;;  %1104 = vmatprep.mubr.msk.f32.mxu1 %vm1297_vm0, %v1296_v0 }
  0xba   : > { %1103 = vmatpush3.msk.msra.mxu1 %vm1038_vm2, %v260_v17  ;;  %1107 = vmatprep.subr.mxu0 %v1296_v0 }
  0xbb   : > { %1105 = vmatmul.mubr.msk.f32.vlgmr.msra.gmra.mxu1 %vm284_vm3, %v277_v11  ;;  %1116 = vmatprep.subr.mxu1 %v1296_v0 }
  0xbc   : > { %1113 = vmatprep.mubr.msk.f32.mxu0 %vm1297_vm0, %v1296_v0  ;;  %1122 = vmatprep.mubr.msk.f32.mxu1 %vm1297_vm0, %v1296_v0 }
  0xc3   : > { %v282_v18 = vpop.permute.xlu0 %281 }
 0x170   : > { %v354_v19 = vpop.f32.mrf.mxu0 }
 0x171   : > { %v355_v20 = vadd.f32 %v354_v19, %v282_v18 }
 0x172   : > { %v1079_v21 = vpop.f32.mrf.mxu0 }
 0x173   : > { %v568_v22 = vmul.f32 0.1, %v355_v20 }
 0x174   : > { %v424_v23 = vpop.f32.mrf.mxu1 }
 0x175   : > { %v425_v24 = vadd.f32 %v424_v23, %v282_v18  ;;  %v572_v25 = vmax.f32 %v355_v20, %v568_v22 }
 0x176   : > { %v1088_v26 = vpop.f32.mrf.mxu1 }
 0x177   : > { %v569_v27 = vmul.f32 0.1, %v425_v24  ;;  %576 = vrot.lane.b32.xlu0 %v572_v25, %s1299_s14  ;;  %588 = vrot.lane.b32.xlu1 %v572_v25, %s1298_s12 }
 0x178   : > { %v494_v28 = vpop.f32.mrf.mxu0 }
 0x179   : > { %v573_v29 = vmax.f32 %v425_v24, %v569_v27  ;;  %v495_v30 = vadd.f32 %v494_v28, %v282_v18 }
 0x17a   : > { %v1097_v31 = vpop.f32.mrf.mxu0 }
 0x17b   : > { %v570_v32 = vmul.f32 0.1, %v495_v30  ;;  %v564_v33 = vpop.f32.mrf.mxu1  ;;  %590 = vrot.lane.b32.xlu1 %v573_v29, %s1298_s12 }
 0x17c   : > { %v565_v34 = vadd.f32 %v564_v33, %v282_v18 }
 0x17d   : > { %v574_v35 = vmax.f32 %v495_v30, %v570_v32  ;;  %v1106_v36 = vpop.f32.mrf.mxu1 }
 0x17e   : > { %v571_v37 = vmul.f32 0.1, %v565_v34 }
 0x17f   : > { %592 = vrot.lane.b32.xlu0 %v574_v35, %s1298_s12  ;;  %578 = vrot.lane.b32.xlu1 %v573_v29, %s1299_s14 }
 0x180   : > { %v575_v38 = vmax.f32 %v565_v34, %v571_v37 }
 0x183   : > { %580 = vrot.lane.b32.xlu0 %v574_v35, %s1299_s14  ;;  %594 = vrot.lane.b32.xlu1 %v575_v38, %s1298_s12  ;;  %s1561_s12 = scalar_lea.hbm %s1609_s5, %s1036_s26 }
 0x187   : > { %604 = vperm.xlu0 %1198, %v601_v39   ;;  %582 = vrot.lane.b32.xlu1 %v575_v38, %s1299_s14  ;;  %s895_s14 = scalar_lea.sflag [#allocation4], %s1431_s23 }
 0x1e9   : > { %v589_v40 = vpop.permute.xlu1 %588  ;;  %v577_v42 = vpop.permute.xlu0 %576 }
 0x1ea   : > { %1108 = vmatpush3.msk.msra.mxu0 %vm1037_vm1, %v589_v40 }
 0x1eb   : > { %1109 = vmatprep.subr.mxu0 %v1296_v0 }
 0x1ec   : > { %1110 = vmatpush3.msra.mxu0 %v572_v25 }
 0x1ed   : > { %1111 = vmatprep.subr.mxu0 %v1296_v0  ;;  %v591_v43 = vpop.permute.xlu1 %590 }
 0x1ee   : > { %1112 = vmatpush3.msk.msra.mxu0 %vm1038_vm2, %v577_v42  ;;  %1117 = vmatpush3.msk.msra.mxu1 %vm1037_vm1, %v591_v43 }
 0x1ef   : > { %1114 = vmatmul.mubr.msk.f32.vlgmr.msra.gmra.mxu0 %vm284_vm3, %v600_v41  ;;  %1118 = vmatprep.subr.mxu1 %v1296_v0 }
 0x1f0   : > { %1119 = vmatpush3.msra.mxu1 %v573_v29  ;;  %1125 = vmatprep.subr.mxu0 %v1296_v0 }
 0x1f1   : > { %v593_v44 = vpop.permute.xlu0 %592  ;;  %1120 = vmatprep.subr.mxu1 %v1296_v0  ;;  %v579_v45 = vpop.permute.xlu1 %578  ;;  %1131 = vmatprep.mubr.msk.f32.mxu0 %vm1297_vm0, %v1296_v0 }
 0x1f2   : > { %1121 = vmatpush3.msk.msra.mxu1 %vm1038_vm2, %v579_v45  ;;  %1126 = vmatpush3.msk.msra.mxu0 %vm1037_vm1, %v593_v44 }
 0x1f3   : > { %1123 = vmatmul.mubr.msk.f32.vlgmr.msra.gmra.mxu1 %vm284_vm3, %v600_v41  ;;  %1127 = vmatprep.subr.mxu0 %v1296_v0 }
 0x1f4   : > { %1128 = vmatpush3.msra.mxu0 %v574_v35  ;;  %1134 = vmatprep.subr.mxu1 %v1296_v0 }
 0x1f5   : > { %v581_v46 = vpop.permute.xlu0 %580  ;;  %1129 = vmatprep.subr.mxu0 %v1296_v0  ;;  %v595_v47 = vpop.permute.xlu1 %594  ;;  %1140 = vmatprep.mubr.msk.f32.mxu1 %vm1297_vm0, %v1296_v0 }
 0x1f6   : > { %1130 = vmatpush3.msk.msra.mxu0 %vm1038_vm2, %v581_v46  ;;  %1135 = vmatpush3.msk.msra.mxu1 %vm1037_vm1, %v595_v47 }
 0x1f7   : > { %1132 = vmatmul.mubr.msk.f32.vlgmr.msra.gmra.mxu0 %vm284_vm3, %v600_v41  ;;  %1136 = vmatprep.subr.mxu1 %v1296_v0 }
 0x1f8   : > { %1137 = vmatpush3.msra.mxu1 %v575_v38 }
 0x1f9   : > { %1138 = vmatprep.subr.mxu1 %v1296_v0  ;;  %v583_v48 = vpop.permute.xlu1 %582 }
 0x1fa   : > { %1139 = vmatpush3.msk.msra.mxu1 %vm1038_vm2, %v583_v48 }
 0x1fb   : > { %1141 = vmatmul.mubr.msk.f32.vlgmr.msra.gmra.mxu1 %vm284_vm3, %v600_v41 }
 0x202   : > { %v605_v49 = vpop.permute.xlu0 %604 }
 0x2af   : > { %v676_v50 = vpop.f32.mrf.mxu0 }
 0x2b0   : > { %v677_v51 = vadd.f32 %v676_v50, %v605_v49 }
 0x2b1   : > { %v1115_v52 = vpop.f32.mrf.mxu0 }
 0x2b2   : > { %890 = vst [vmem:[%s242_s13] sm:$0xff] %v677_v51 }
 0x2b3   : > { %v746_v53 = vpop.f32.mrf.mxu1 }
 0x2b4   : > { %v747_v54 = vadd.f32 %v746_v53, %v605_v49 }
 0x2b5   : > { %v1124_v55 = vpop.f32.mrf.mxu1 }
 0x2b6   : > { %891 = vst [vmem:[%s242_s13 + $0x8] sm:$0xff] %v747_v54 }
 0x2b7   : > { %v816_v56 = vpop.f32.mrf.mxu0 }
 0x2b8   : > { %v817_v57 = vadd.f32 %v816_v56, %v605_v49 }
 0x2b9   : > { %v1133_v58 = vpop.f32.mrf.mxu0 }
 0x2ba   : > { %892 = vst [vmem:[%s242_s13 + $0x10] sm:$0xff] %v817_v57 }
 0x2bb   : > { %v886_v59 = vpop.f32.mrf.mxu1 }
 0x2bc   : > { %v887_v60 = vadd.f32 %v886_v59, %v605_v49 }
 0x2bd   : > { %v1142_v61 = vpop.f32.mrf.mxu1 }
 0x2be   : > { %893 = vst [vmem:[%s242_s13 + $0x18] sm:$0xff] %v887_v60 }
 0x2bf   : > { %1240 = shalt.err (!%p1237_p10)
}
 0x2c0   : > { %s1241_s8 = scalar_lea.hbm %s1561_s12, 512  ;;  %s1245_s10 = scalar_lea.hbm %s1609_s5, 1024 }
 0x2c1   : > { %p1242_p0 = scmp.ne.s32.totalorder %s1561_s12, %s1241_s8  ;;  %p1246_p1 = scmp.lt.s32.totalorder %s1561_s12, %s1609_s5 }
 0x2c2   : > { %p1247_p3 = scmp.lt.s32.totalorder %s1245_s10, %s1241_s8 }
 0x2c3   : > { %p1243_p2 = pnand %p1242_p0, %p1618_p12 }
 0x2c4   : > { %p1248_p6 = por %p1247_p3, %p1246_p1 }
 0x2c5   : > { %p1244_p9 = pneg %p1243_p2 }
 0x2c7   : > { %p1249_p11 = pnand %p1248_p6, %p1244_p9 }
 0x2c9   : > { %1252 = shalt.err (!%p1249_p11)
}
 0x2ca   : > { %s1302_s26 = smov 128   ;;  %s1303_s25 = smov 8  }
 0x2cb   : > { %1145 = dma.vmem_to_hbm [thread:$0]  (%p1618_p12), %s1556_s17, 512, %s1561_s12, %s895_s14, %s1302_s26, %s1302_s26, %s1303_s25  }
 0x2cc PF: > { %s923_s28 = sand.u32 1, %s1279_s18   ;;  %p1619_p13 = scmp.ne.s32.totalorder %s1615_s6, 0 }
 0x2cd   : > { %p1620_p4 = scmp.ge.s32.totalorder %s1291_s21, 2  ;;  %s924_s29 = scalar_lea.sflag [#allocation4], %s923_s28 }
 0x2cf   : > { %p1152_p5 = pnand %p1620_p4, %p1619_p13 }
 0x2d1   : > { %p1153_p7 = pneg %p1152_p5 }
 0x2d3   : > { %1274 = dma.done.wait (%p1153_p7), %s924_s29, 512  }
 0x2d4   : > { %1276 = vsyncadd (%p1153_p7), %s924_s29, 4294966784  ;;  %p18_p8 = scmp.ge.s32.totalorder %s1359_s24, 4   ;;  %s1621_s18 = smov %s1283_s19 }
 0x2d5   : > { %s1622_s19 = smov %s1287_s20  ;;  %s1623_s20 = smov %s1371_s27 }
 0x2d6   : > { %s1624_s21 = smov %s1359_s24  ;;  %20 = sbr.rel (!%p18_p8) target bundleno = 5 (0x5), region = 85 }
 0x2db   :  { %929 = vsyncpa [#allocation3], 1 }
 0x2dc   :  { %931 = vsyncpa [#allocation3 + $0x1], 1 }
 0x2dd   :  { %932 = vsyncpa [#allocation4], 1 }
 0x2de   :  { %934 = vsyncpa [#allocation4 + $0x1], 1 }

</bundles_post_ra>
